<compile_context>
chip_gen: v6e
topology: v6e:2x2x1
jax: 0.10.0
libtpu: 0.0.40
codegen_flags: <defaults>
</compile_context>

<pallas_src>
import functools

import jax
import jax.numpy as jnp
from jax.experimental import pallas as pl
from jax.experimental.pallas import tpu as pltpu

LANE = 128
SMALL_FUSED_MAX_NPAD = 512  # below this, the whole forward fits in VMEM


def _round_up(n, m):
    return ((n + m - 1) // m) * m


def _pick_tile(n_pad):
    """Largest 128-multiple tile dividing n_pad, preferring >=2 row programs
    (v7x megacore) and capping at 1024 (keeps the double-buffered A tile +
    activations + f32 accumulator ~6 MiB, under v7x's 32 MiB scoped VMEM)."""
    candidates = [1024, 896, 768, 640, 512, 384, 256, 128]
    for t in candidates:
        if n_pad % t == 0 and n_pad // t >= 2:
            return t
    for t in candidates:
        if n_pad % t == 0:
            return t
    return 128


# ---------------------------------------------------------------------------
# Kernel A: fully fused forward for small graphs (everything VMEM-resident).
# ---------------------------------------------------------------------------
def _fused_forward_kernel(a_ref, x_ref, w1_ref, b1_ref, w2_ref, b2_ref,
                          wo_ref, bo_ref, out_ref):
    a = a_ref[...]                                             # bf16 (n, n)

    # Layer 1: relu(A @ (X @ W1) + b1)
    xw = jnp.dot(x_ref[...], w1_ref[...], preferred_element_type=jnp.float32)
    h1 = jnp.dot(a, xw.astype(jnp.bfloat16),
                 preferred_element_type=jnp.float32) + b1_ref[...]
    h1 = jnp.maximum(h1, 0.0).astype(jnp.bfloat16)

    # Layer 2: relu(A @ (h1 @ W2) + b2)
    hw = jnp.dot(h1, w2_ref[...], preferred_element_type=jnp.float32)
    h2 = jnp.dot(a, hw.astype(jnp.bfloat16),
                 preferred_element_type=jnp.float32) + b2_ref[...]
    h2 = jnp.maximum(h2, 0.0).astype(jnp.bfloat16)

    # Output head (lane-dense: only column 0 of wo/bo is meaningful).
    out_ref[...] = (jnp.dot(h2, wo_ref[...],
                            preferred_element_type=jnp.float32) + bo_ref[...])


def fused_forward(a_pad, x_pad, p):
    n_pad = a_pad.shape[0]
    f_pad = x_pad.shape[1]
    h_pad = p["w1"].shape[1]
    return pl.pallas_call(
        _fused_forward_kernel,
        out_shape=jax.ShapeDtypeStruct((n_pad, LANE), jnp.float32),
        grid_spec=pltpu.PrefetchScalarGridSpec(
            num_scalar_prefetch=0,
            grid=(1,),
            in_specs=[
                pl.BlockSpec((n_pad, n_pad), lambda i: (0, 0)),
                pl.BlockSpec((n_pad, f_pad), lambda i: (0, 0)),
                pl.BlockSpec((f_pad, h_pad), lambda i: (0, 0)),
                pl.BlockSpec((1, h_pad), lambda i: (0, 0)),
                pl.BlockSpec((h_pad, h_pad), lambda i: (0, 0)),
                pl.BlockSpec((1, h_pad), lambda i: (0, 0)),
                pl.BlockSpec((h_pad, LANE), lambda i: (0, 0)),
                pl.BlockSpec((1, LANE), lambda i: (0, 0)),
            ],
            out_specs=pl.BlockSpec((n_pad, LANE), lambda i: (0, 0)),
        ),
        compiler_params=pltpu.CompilerParams(
            dimension_semantics=("arbitrary",)),
    )(a_pad, x_pad, p["w1"], p["b1"], p["w2"], p["b2"], p["wo"], p["bo"])


# ---------------------------------------------------------------------------
# Kernel B: tiled GCN layer with the pre-multiply fused in:
#   out = relu(A @ (H @ W) + b)
#   grid = (n_pad/TM, n_pad/TK); K axis reduces into an f32 VMEM accumulator.
# ---------------------------------------------------------------------------
def _gcn_layer_kernel(a_ref, h_ref, w_ref, b_ref, out_ref, acc_ref, *, relu):
    k = pl.program_id(1)

    @pl.when(k == 0)
    def _():
        acc_ref[...] = jnp.zeros_like(acc_ref)

    hw = jnp.dot(h_ref[...], w_ref[...], preferred_element_type=jnp.float32)
    acc_ref[...] += jnp.dot(a_ref[...], hw.astype(jnp.bfloat16),
                            preferred_element_type=jnp.float32)

    @pl.when(k == pl.num_programs(1) - 1)
    def _():
        h = acc_ref[...] + b_ref[...]
        if relu:
            h = jnp.maximum(h, 0.0)
        out_ref[...] = h.astype(out_ref.dtype)


def gcn_layer(a_pad, h, w, b, *, relu, out_dtype):
    n_pad = a_pad.shape[0]
    cdim = h.shape[1]
    hdim = w.shape[1]
    tm = tk = _pick_tile(n_pad)
    kernel = functools.partial(_gcn_layer_kernel, relu=relu)
    return pl.pallas_call(
        kernel,
        out_shape=jax.ShapeDtypeStruct((n_pad, hdim), out_dtype),
        grid_spec=pltpu.PrefetchScalarGridSpec(
            num_scalar_prefetch=0,
            grid=(n_pad // tm, n_pad // tk),
            in_specs=[
                pl.BlockSpec((tm, tk), lambda i, k: (i, k)),
                pl.BlockSpec((tk, cdim), lambda i, k: (k, 0)),
                pl.BlockSpec((cdim, hdim), lambda i, k: (0, 0)),
                pl.BlockSpec((1, hdim), lambda i, k: (0, 0)),
            ],
            out_specs=pl.BlockSpec((tm, hdim), lambda i, k: (i, 0)),
            scratch_shapes=[pltpu.VMEM((tm, hdim), jnp.float32)],
        ),
        compiler_params=pltpu.CompilerParams(
            dimension_semantics=("parallel", "arbitrary")),
    )(a_pad, h, w, b)


# ---------------------------------------------------------------------------
# Kernel C: tiled GCN layer (fused premul) with the output head fused into
# the finalize:   h = relu(A @ (H @ W) + b);   score = h @ Wo + bo
# ---------------------------------------------------------------------------
def _gcn_layer_head_kernel(a_ref, h_ref, w_ref, b_ref, wo_ref, bo_ref,
                           out_ref, acc_ref):
    k = pl.program_id(1)

    @pl.when(k == 0)
    def _():
        acc_ref[...] = jnp.zeros_like(acc_ref)

    hw = jnp.dot(h_ref[...], w_ref[...], preferred_element_type=jnp.float32)
    acc_ref[...] += jnp.dot(a_ref[...], hw.astype(jnp.bfloat16),
                            preferred_element_type=jnp.float32)

    @pl.when(k == pl.num_programs(1) - 1)
    def _():
        h = jnp.maximum(acc_ref[...] + b_ref[...], 0.0).astype(jnp.bfloat16)
        out_ref[...] = (jnp.dot(h, wo_ref[...],
                                preferred_element_type=jnp.float32)
                        + bo_ref[...])


def gcn_layer_head(a_pad, h, w, b, wo, bo):
    n_pad = a_pad.shape[0]
    cdim = h.shape[1]
    hdim = w.shape[1]
    odim = wo.shape[1]
    tm = tk = _pick_tile(n_pad)
    return pl.pallas_call(
        _gcn_layer_head_kernel,
        out_shape=jax.ShapeDtypeStruct((n_pad, odim), jnp.float32),
        grid_spec=pltpu.PrefetchScalarGridSpec(
            num_scalar_prefetch=0,
            grid=(n_pad // tm, n_pad // tk),
            in_specs=[
                pl.BlockSpec((tm, tk), lambda i, k: (i, k)),
                pl.BlockSpec((tk, cdim), lambda i, k: (k, 0)),
                pl.BlockSpec((cdim, hdim), lambda i, k: (0, 0)),
                pl.BlockSpec((1, hdim), lambda i, k: (0, 0)),
                pl.BlockSpec((hdim, odim), lambda i, k: (0, 0)),
                pl.BlockSpec((1, odim), lambda i, k: (0, 0)),
            ],
            out_specs=pl.BlockSpec((tm, odim), lambda i, k: (i, 0)),
            scratch_shapes=[pltpu.VMEM((tm, hdim), jnp.float32)],
        ),
        compiler_params=pltpu.CompilerParams(
            dimension_semantics=("parallel", "arbitrary")),
    )(a_pad, h, w, b, wo, bo)


# ---------------------------------------------------------------------------
# Glue: PyG GCNConv normalization (gcn_norm) -> dense A_hat, built directly
# at the padded size (padded rows/cols stay exactly zero -> inert).
#   - add self-loops with weight 1
#   - deg[i] = sum of incoming edge weights (scatter over col / dst)
#   - norm = deg^-1/2[row] * w * deg^-1/2[col],  A_hat[col, row] += norm
# Data-dependent scatter: stays in plain JAX.
# ---------------------------------------------------------------------------
def build_norm_adj(edge_index, edge_weight, num_nodes, n_pad):
    row, col = edge_index[0], edge_index[1]
    loop = jnp.arange(num_nodes, dtype=edge_index.dtype)
    row = jnp.concatenate([row, loop])
    col = jnp.concatenate([col, loop])
    ew = jnp.concatenate(
        [edge_weight, jnp.ones((num_nodes,), dtype=edge_weight.dtype)])
    deg = jnp.zeros((num_nodes,), dtype=jnp.float32).at[col].add(ew)
    dis = jnp.where(deg > 0, jax.lax.rsqrt(deg), 0.0)
    norm = dis[row] * ew * dis[col]
    a_hat = jnp.zeros((n_pad, n_pad), dtype=jnp.float32)
    a_hat = a_hat.at[col, row].add(norm)
    return a_hat.astype(jnp.bfloat16)


# ---------------------------------------------------------------------------
# Parameter padding — done ONCE, outside the jitted forward.
# Padded weight columns / bias columns are exactly zero so padded hidden
# channels remain zero through every layer.
# ---------------------------------------------------------------------------
def pad_params(params):
    F, H = params["w1"].shape
    f_pad = _round_up(F, LANE)
    h_pad = _round_up(H, LANE)
    return {
        "w_e": params["w_e"], "b_e": params["b_e"],      # edge MLP: plain JAX
        "w1": jnp.zeros((f_pad, h_pad), jnp.bfloat16).at[:F, :H].set(
            params["w1"].astype(jnp.bfloat16)),
        "b1": jnp.zeros((1, h_pad), jnp.float32).at[:, :H].set(params["b1"]),
        "w2": jnp.zeros((h_pad, h_pad), jnp.bfloat16).at[:H, :H].set(
            params["w2"].astype(jnp.bfloat16)),
        "b2": jnp.zeros((1, h_pad), jnp.float32).at[:, :H].set(params["b2"]),
        "wo": jnp.zeros((h_pad, LANE), jnp.bfloat16).at[:H, :1].set(
            params["wo"].astype(jnp.bfloat16)),
        "bo": jnp.zeros((1, LANE), jnp.float32).at[:, :1].set(params["bo"]),
    }


# ---------------------------------------------------------------------------
# Forward pass.
# ---------------------------------------------------------------------------
def simple_gnn_forward(padded, x, edge_index, edge_attr):
    N, F = x.shape
    f_pad = padded["w1"].shape[0]
    n_pad = _round_up(N, LANE)

    # Edge MLP fused into plain JAX ((E,8)@(8,1): dispatch cost >> compute).
    ew = jax.nn.sigmoid(edge_attr @ padded["w_e"] + padded["b_e"]).reshape(-1)

    # Dense normalized adjacency at padded size, bf16.
    a_pad = build_norm_adj(edge_index, ew, N, n_pad)

    # Lane-dense node features (data-dependent -> padded inside the jit).
    x_pad = jnp.zeros((n_pad, f_pad), jnp.bfloat16).at[:N, :F].set(
        x.astype(jnp.bfloat16))

    # TODO(synk): F.dropout(p=0.2) omitted — module run in eval mode (identity).
    if n_pad <= SMALL_FUSED_MAX_NPAD:
        # Single fused kernel, everything VMEM-resident.
        score_pad = fused_forward(a_pad, x_pad, padded)
    else:
        # Tiled path: one pallas_call per layer, premul + head fused in.
        h1 = gcn_layer(a_pad, x_pad, padded["w1"], padded["b1"],
                       relu=True, out_dtype=jnp.bfloat16)
        score_pad = gcn_layer_head(a_pad, h1, padded["w2"], padded["b2"],
                                   padded["wo"], padded["bo"])

    return score_pad[:N, :1]


def simple_gnn_reference(params, x, edge_index, edge_attr):
    N = x.shape[0]
    ew = jax.nn.sigmoid(edge_attr @ params["w_e"] + params["b_e"]).reshape(-1)
    a_hat = build_norm_adj(edge_index, ew, N, N).astype(jnp.float32)
    h = jnp.maximum(a_hat @ (x @ params["w1"]) + params["b1"], 0.0)
    h = jnp.maximum(a_hat @ (h @ params["w2"]) + params["b2"], 0.0)
    return h @ params["wo"] + params["bo"]


if __name__ == "__main__":
    N, F, H, E = 16, 8, 32, 24  # nodes, node features, hidden channels, edges

    key = jax.random.PRNGKey(0)
    ks = jax.random.split(key, 16)

    x = jax.random.normal(ks[0], (N, F), dtype=jnp.float32)
    edge_index = jax.random.randint(ks[1], (2, E), 0, N, dtype=jnp.int32)
    edge_attr = jax.random.normal(ks[2], (E, 8), dtype=jnp.float32)

    def uni(k, shape, scale):
        return jax.random.uniform(k, shape, jnp.float32, -scale, scale)

    params = {
        # edge_nn: Linear(8, 1) stored as [in, out]; bias [1, 1]
        "w_e": uni(ks[3], (8, 1), 0.35),
        "b_e": uni(ks[4], (1, 1), 0.35),
        # conv1: GCNConv(F, H): weight [F, H], bias [1, H]
        "w1": uni(ks[5], (F, H), 0.35),
        "b1": uni(ks[6], (1, H), 0.05),
        # conv2: GCNConv(H, H)
        "w2": uni(ks[7], (H, H), 0.18),
        "b2": uni(ks[8], (1, H), 0.05),
        # output: Linear(H, 1)
        "wo": uni(ks[9], (H, 1), 0.18),
        "bo": uni(ks[10], (1, 1), 0.18),
    }

    padded = pad_params(params)          # hoisted out of the jitted forward
    fwd = jax.jit(simple_gnn_forward)

    # --- Small graph (actual workload): single fused VMEM-resident kernel ---
    score = jax.block_until_ready(fwd(padded, x, edge_index, edge_attr))
    ref = simple_gnn_reference(params, x, edge_index, edge_attr)
    assert score.shape == (N, 1)
    # bf16 adjacency / activations -> relaxed tolerance vs the f32 reference.
    assert jnp.allclose(score, ref, atol=5e-2, rtol=5e-2), "small-path mismatch"

    # --- Larger graph: exercises the tiled (premul+head fused) path --------
    N2, E2 = 700, 4000
    x2 = jax.random.normal(ks[11], (N2, F), dtype=jnp.float32)
    edge_index2 = jax.random.randint(ks[12], (2, E2), 0, N2, dtype=jnp.int32)
    edge_attr2 = jax.random.normal(ks[13], (E2, 8), dtype=jnp.float32)

    score2 = jax.block_until_ready(fwd(padded, x2, edge_index2, edge_attr2))
    ref2 = simple_gnn_reference(params, x2, edge_index2, edge_attr2)
    assert score2.shape == (N2, 1)
    rel_err = jnp.max(jnp.abs(score2 - ref2)) / (jnp.max(jnp.abs(ref2)) + 1e-6)
    assert rel_err < 5e-2, f"large-path mismatch (rel_err={rel_err})"

    print("KERNEL_OK")
</pallas_src>

<mosaic_0001>
module attributes {stable_mosaic.version = 11 : i64} {
  func.func private @main(%arg0: i32) attributes {dimension_semantics = [#tpu.dimension_semantics<core_parallel>], iteration_bounds = array<i64: 2>, tpu.core_type = #tpu.core_type<sc_scalar_subcore>, window_params = []} {
    return
  }
}

module attributes {stable_mosaic.version = 11 : i64} {
  func.func private @main(%arg0: i32) attributes {dimension_semantics = [#tpu.dimension_semantics<core_parallel>], iteration_bounds = array<i64: 2>, tpu.core_type = #tpu.core_type<sc_scalar_subcore>, window_params = []} {
    return
  }
}

module attributes {stable_mosaic.version = 11 : i64} {
  func.func @_fused_forward_kernel(%arg0: i32, %arg1: memref<128x128xbf16, #tpu.memory_space<vmem>>, %arg2: memref<128x128xbf16, #tpu.memory_space<vmem>>, %arg3: memref<128x128xbf16, #tpu.memory_space<vmem>>, %arg4: memref<1x128xf32, #tpu.memory_space<vmem>>, %arg5: memref<128x128xbf16, #tpu.memory_space<vmem>>, %arg6: memref<1x128xf32, #tpu.memory_space<vmem>>, %arg7: memref<128x128xbf16, #tpu.memory_space<vmem>>, %arg8: memref<1x128xf32, #tpu.memory_space<vmem>>, %arg9: memref<128x128xf32, #tpu.memory_space<vmem>>) attributes {dimension_semantics = [#tpu.dimension_semantics<arbitrary>], iteration_bounds = array<i64: 1>, scalar_prefetch = 0 : i64, scratch_operands = 0 : i64, tpu.core_type = #tpu.core_type<tc>, window_params = [{pipeline_mode = #tpu.pipeline_mode<synchronous>, transform_indices = @transform_0, window_bounds = array<i64: 128, 128>}, {pipeline_mode = #tpu.pipeline_mode<synchronous>, transform_indices = @transform_1, window_bounds = array<i64: 128, 128>}, {pipeline_mode = #tpu.pipeline_mode<synchronous>, transform_indices = @transform_2, window_bounds = array<i64: 128, 128>}, {pipeline_mode = #tpu.pipeline_mode<synchronous>, transform_indices = @transform_3, window_bounds = array<i64: 1, 128>}, {pipeline_mode = #tpu.pipeline_mode<synchronous>, transform_indices = @transform_4, window_bounds = array<i64: 128, 128>}, {pipeline_mode = #tpu.pipeline_mode<synchronous>, transform_indices = @transform_5, window_bounds = array<i64: 1, 128>}, {pipeline_mode = #tpu.pipeline_mode<synchronous>, transform_indices = @transform_6, window_bounds = array<i64: 128, 128>}, {pipeline_mode = #tpu.pipeline_mode<synchronous>, transform_indices = @transform_7, window_bounds = array<i64: 1, 128>}, {pipeline_mode = #tpu.pipeline_mode<synchronous>, transform_indices = @transform_8, window_bounds = array<i64: 128, 128>}]} {
    %c0 = arith.constant 0 : index
    %c0_0 = arith.constant 0 : index
    %0 = vector.load %arg1[%c0, %c0_0] : memref<128x128xbf16, #tpu.memory_space<vmem>>, vector<128x128xbf16>
    %c0_1 = arith.constant 0 : index
    %c0_2 = arith.constant 0 : index
    %1 = vector.load %arg2[%c0_1, %c0_2] : memref<128x128xbf16, #tpu.memory_space<vmem>>, vector<128x128xbf16>
    %c0_3 = arith.constant 0 : index
    %c0_4 = arith.constant 0 : index
    %2 = vector.load %arg3[%c0_3, %c0_4] : memref<128x128xbf16, #tpu.memory_space<vmem>>, vector<128x128xbf16>
    %cst = arith.constant dense<0.000000e+00> : vector<128x128xf32>
    %3 = tpu.matmul %1, %2, %cst {dimension_numbers = #tpu.dot_dimension_numbers<[1], [0], [0], [1], [0, 0, 1, 1], [], []>} : vector<128x128xbf16>, vector<128x128xbf16>, vector<128x128xf32> -> vector<128x128xf32>
    %4 = arith.truncf %3 : vector<128x128xf32> to vector<128x128xbf16>
    %cst_5 = arith.constant dense<0.000000e+00> : vector<128x128xf32>
    %5 = tpu.matmul %0, %4, %cst_5 {dimension_numbers = #tpu.dot_dimension_numbers<[1], [0], [0], [1], [0, 0, 1, 1], [], []>} : vector<128x128xbf16>, vector<128x128xbf16>, vector<128x128xf32> -> vector<128x128xf32>
    %c0_6 = arith.constant 0 : index
    %c0_7 = arith.constant 0 : index
    %6 = vector.load %arg4[%c0_6, %c0_7] : memref<1x128xf32, #tpu.memory_space<vmem>>, vector<1x128xf32>
    %7 = vector.broadcast %6 : vector<1x128xf32> to vector<128x128xf32>
    %8 = arith.addf %5, %7 : vector<128x128xf32>
    %cst_8 = arith.constant 0.000000e+00 : f32
    %9 = vector.broadcast %cst_8 : f32 to vector<128x128xf32>
    %10 = arith.maximumf %8, %9 : vector<128x128xf32>
    %11 = arith.truncf %10 : vector<128x128xf32> to vector<128x128xbf16>
    %c0_9 = arith.constant 0 : index
    %c0_10 = arith.constant 0 : index
    %12 = vector.load %arg5[%c0_9, %c0_10] : memref<128x128xbf16, #tpu.memory_space<vmem>>, vector<128x128xbf16>
    %cst_11 = arith.constant dense<0.000000e+00> : vector<128x128xf32>
    %13 = tpu.matmul %11, %12, %cst_11 {dimension_numbers = #tpu.dot_dimension_numbers<[1], [0], [0], [1], [0, 0, 1, 1], [], []>} : vector<128x128xbf16>, vector<128x128xbf16>, vector<128x128xf32> -> vector<128x128xf32>
    %14 = arith.truncf %13 : vector<128x128xf32> to vector<128x128xbf16>
    %cst_12 = arith.constant dense<0.000000e+00> : vector<128x128xf32>
    %15 = tpu.matmul %0, %14, %cst_12 {dimension_numbers = #tpu.dot_dimension_numbers<[1], [0], [0], [1], [0, 0, 1, 1], [], []>} : vector<128x128xbf16>, vector<128x128xbf16>, vector<128x128xf32> -> vector<128x128xf32>
    %c0_13 = arith.constant 0 : index
    %c0_14 = arith.constant 0 : index
    %16 = vector.load %arg6[%c0_13, %c0_14] : memref<1x128xf32, #tpu.memory_space<vmem>>, vector<1x128xf32>
    %17 = vector.broadcast %16 : vector<1x128xf32> to vector<128x128xf32>
    %18 = arith.addf %15, %17 : vector<128x128xf32>
    %cst_15 = arith.constant 0.000000e+00 : f32
    %19 = vector.broadcast %cst_15 : f32 to vector<128x128xf32>
    %20 = arith.maximumf %18, %19 : vector<128x128xf32>
    %21 = arith.truncf %20 : vector<128x128xf32> to vector<128x128xbf16>
    %c0_16 = arith.constant 0 : index
    %c0_17 = arith.constant 0 : index
    %22 = vector.load %arg7[%c0_16, %c0_17] : memref<128x128xbf16, #tpu.memory_space<vmem>>, vector<128x128xbf16>
    %cst_18 = arith.constant dense<0.000000e+00> : vector<128x128xf32>
    %23 = tpu.matmul %21, %22, %cst_18 {dimension_numbers = #tpu.dot_dimension_numbers<[1], [0], [0], [1], [0, 0, 1, 1], [], []>} : vector<128x128xbf16>, vector<128x128xbf16>, vector<128x128xf32> -> vector<128x128xf32>
    %c0_19 = arith.constant 0 : index
    %c0_20 = arith.constant 0 : index
    %24 = vector.load %arg8[%c0_19, %c0_20] : memref<1x128xf32, #tpu.memory_space<vmem>>, vector<1x128xf32>
    %25 = vector.broadcast %24 : vector<1x128xf32> to vector<128x128xf32>
    %26 = arith.addf %23, %25 : vector<128x128xf32>
    %c0_21 = arith.constant 0 : index
    %c0_22 = arith.constant 0 : index
    %27 = vector.load %arg9[%c0_21, %c0_22] : memref<128x128xf32, #tpu.memory_space<vmem>>, vector<128x128xf32>
    tpu.vector_store %arg9[%c0_21, %c0_22], %26 {strides = array<i32>} : memref<128x128xf32, #tpu.memory_space<vmem>>, vector<128x128xf32>,
    return
  }
  func.func @transform_0(%arg0: i32) -> (i32, i32) {
    %c0_i32 = arith.constant 0 : i32
    %c0_i32_0 = arith.constant 0 : i32
    %c0_i32_1 = arith.constant 0 : i32
    return %c0_i32, %c0_i32_0 : i32, i32
  }
  func.func @transform_1(%arg0: i32) -> (i32, i32) {
    %c0_i32 = arith.constant 0 : i32
    %c0_i32_0 = arith.constant 0 : i32
    %c0_i32_1 = arith.constant 0 : i32
    return %c0_i32, %c0_i32_0 : i32, i32
  }
  func.func @transform_2(%arg0: i32) -> (i32, i32) {
    %c0_i32 = arith.constant 0 : i32
    %c0_i32_0 = arith.constant 0 : i32
    %c0_i32_1 = arith.constant 0 : i32
    return %c0_i32, %c0_i32_0 : i32, i32
  }
  func.func @transform_3(%arg0: i32) -> (i32, i32) {
    %c0_i32 = arith.constant 0 : i32
    %c0_i32_0 = arith.constant 0 : i32
    %c0_i32_1 = arith.constant 0 : i32
    return %c0_i32, %c0_i32_0 : i32, i32
  }
  func.func @transform_4(%arg0: i32) -> (i32, i32) {
    %c0_i32 = arith.constant 0 : i32
    %c0_i32_0 = arith.constant 0 : i32
    %c0_i32_1 = arith.constant 0 : i32
    return %c0_i32, %c0_i32_0 : i32, i32
  }
  func.func @transform_5(%arg0: i32) -> (i32, i32) {
    %c0_i32 = arith.constant 0 : i32
    %c0_i32_0 = arith.constant 0 : i32
    %c0_i32_1 = arith.constant 0 : i32
    return %c0_i32, %c0_i32_0 : i32, i32
  }
  func.func @transform_6(%arg0: i32) -> (i32, i32) {
    %c0_i32 = arith.constant 0 : i32
    %c0_i32_0 = arith.constant 0 : i32
    %c0_i32_1 = arith.constant 0 : i32
    return %c0_i32, %c0_i32_0 : i32, i32
  }
  func.func @transform_7(%arg0: i32) -> (i32, i32) {
    %c0_i32 = arith.constant 0 : i32
    %c0_i32_0 = arith.constant 0 : i32
    %c0_i32_1 = arith.constant 0 : i32
    return %c0_i32, %c0_i32_0 : i32, i32
  }
  func.func @transform_8(%arg0: i32) -> (i32, i32) {
    %c0_i32 = arith.constant 0 : i32
    %c0_i32_0 = arith.constant 0 : i32
    %c0_i32_1 = arith.constant 0 : i32
    return %c0_i32, %c0_i32_0 : i32, i32
  }
}

</mosaic_0001>

<bundles_post_ra>
// kernel: simple_gnn_forward.1
= control target key start
LH: loop header
LB: loop body
LE: loop exit
PB: predicated region body
PF: predicated region fallthrough
CT: control target
= control target key end

     0   :  { %s1533_s2 = inlined_call_operand.vmem [shape: bf16[128,128], index: 2, kind: input, shape index: {}]   ;;  %s1534_s1 = inlined_call_operand.vmem [shape: bf16[128,128], index: 1, kind: input, shape index: {}]   ;;  %s1535_s0 = inlined_call_operand.vmem [shape: bf16[128,128], index: 0, kind: input, shape index: {}]   ;;  %s1536_s4 = inlined_call_operand.vmem [shape: bf16[128,128], index: 4, kind: input, shape index: {}]   ;;  %s1537_s3 = inlined_call_operand.vmem [shape: f32[1,128], index: 3, kind: input, shape index: {}]   ;;  %s1538_s6 = inlined_call_operand.vmem [shape: bf16[128,128], index: 6, kind: input, shape index: {}]   ;;  %s1539_s5 = inlined_call_operand.vmem [shape: f32[1,128], index: 5, kind: input, shape index: {}]   ;;  %s1540_s7 = inlined_call_operand.vmem [shape: f32[1,128], index: 7, kind: input, shape index: {}]   ;;  %s1541_s8 = inlined_call_operand.vmem [shape: f32[128,128], index: 8, kind: output, shape index: {}]  }
   0x1   :  { %v1239_v0 = vld [vmem:[%s1533_s2 + $0x38] sm:$0xff]   ;;  %v1240_v1 = vld [vmem:[%s1533_s2 + $0x30] sm:$0xff]   ;;  %v1241_v2 = vld [vmem:[%s1533_s2 + $0x28] sm:$0xff]  }
   0x2   :  { %1063 = vmatprep.subr.bf16.mxu0 %v1239_v0  ;;  %v1242_v3 = vld [vmem:[%s1533_s2 + $0x20] sm:$0xff]   ;;  %v1243_v5 = vld [vmem:[%s1533_s2 + $0x18] sm:$0xff]   ;;  %v1244_v6 = vld [vmem:[%s1533_s2 + $0x10] sm:$0xff]  }
   0x3   :  { %1064 = vmatpush3.bf16.msra.mxu0 %v1239_v0  ;;  %v1247_v4 = vld [vmem:[%s1534_s1] sm:$0xff]   ;;  %v1245_v7 = vld [vmem:[%s1533_s2 + $0x8] sm:$0xff]   ;;  %v1249_v10 = vld [vmem:[%s1534_s1 + $0x10] sm:$0xff]  }
   0x4   :  { %1065 = vmatprep.subr.bf16.mxu0 %v1240_v1  ;;  %1079 = vmatprep.mubr.bf16.mxu0 %v1247_v4  ;;  %v1246_v8 = vld [vmem:[%s1533_s2] sm:$0xff]   ;;  %v1248_v9 = vld [vmem:[%s1534_s1 + $0x8] sm:$0xff]   ;;  %v1250_v11 = vld [vmem:[%s1534_s1 + $0x18] sm:$0xff]  }
   0x5   :  { %v1251_v12 = vld [vmem:[%s1534_s1 + $0x20] sm:$0xff]   ;;  %v1252_v13 = vld [vmem:[%s1534_s1 + $0x28] sm:$0xff]   ;;  %v1253_v14 = vld [vmem:[%s1534_s1 + $0x30] sm:$0xff]  }
   0x6   :  { %v1254_v15 = vld [vmem:[%s1534_s1 + $0x38] sm:$0xff]   ;;  %v1375_v16 = vld [vmem:[%s1535_s0] sm:$0xff]   ;;  %v1264_v18 = vld [vmem:[%s1536_s4 + $0x30] sm:$0xff]  }
   0x7   :  { %1066 = vmatpush3.bf16.msra.mxu0 %v1240_v1  ;;  %1111 = vmatprep.mubr.bf16.mxu1 %v1375_v16  ;;  %v1263_v17 = vld [vmem:[%s1536_s4 + $0x38] sm:$0xff]   ;;  %v1265_v19 = vld [vmem:[%s1536_s4 + $0x28] sm:$0xff]   ;;  %v1266_v20 = vld [vmem:[%s1536_s4 + $0x20] sm:$0xff]  }
   0x8   :  { %1067 = vmatprep.subr.bf16.mxu0 %v1241_v2  ;;  %v1267_v21 = vld [vmem:[%s1536_s4 + $0x18] sm:$0xff]   ;;  %v1396_v46 = vld [vmem:[%s1535_s0 + $0x8] sm:$0xff]   ;;  %v1401_v47 = vld [vmem:[%s1535_s0 + $0x10] sm:$0xff]  }
   0x9   :  { %v1408_v48 = vld [vmem:[%s1535_s0 + $0x18] sm:$0xff]   ;;  %v1413_v49 = vld [vmem:[%s1535_s0 + $0x20] sm:$0xff]   ;;  %v1420_v50 = vld [vmem:[%s1535_s0 + $0x28] sm:$0xff]  }
   0xa   :  { %v1425_v51 = vld [vmem:[%s1535_s0 + $0x30] sm:$0xff]   ;;  %v1432_v52 = vld [vmem:[%s1535_s0 + $0x38] sm:$0xff]   ;;  %v1269_v54 = vld [vmem:[%s1536_s4 + $0x8] sm:$0xff]  }
   0xb   :  { %1068 = vmatpush3.bf16.msra.mxu0 %v1241_v2  ;;  %v1268_v53 = vld [vmem:[%s1536_s4 + $0x10] sm:$0xff]   ;;  %v1270_v55 = vld [vmem:[%s1536_s4] sm:$0xff]  }
   0xc   :  { %1069 = vmatprep.subr.bf16.mxu0 %v1242_v3  ;;  %v956_v58 = vld [vmem:[%s1537_s3] ss:$0 sm:$0xff] }
   0xf   :  { %1070 = vmatpush3.bf16.msra.mxu0 %v1242_v3 }
  0x10   :  { %1071 = vmatprep.subr.bf16.mxu0 %v1243_v5 }
  0x13   :  { %1072 = vmatpush3.bf16.msra.mxu0 %v1243_v5 }
  0x14   :  { %1073 = vmatprep.subr.bf16.mxu0 %v1244_v6 }
  0x17   :  { %1074 = vmatpush3.bf16.msra.mxu0 %v1244_v6 }
  0x18   :  { %1075 = vmatprep.subr.bf16.mxu0 %v1245_v7 }
  0x1b   :  { %1076 = vmatpush3.bf16.msra.mxu0 %v1245_v7 }
  0x1c   :  { %1077 = vmatprep.subr.bf16.mxu0 %v1246_v8 }
  0x1f   :  { %1078 = vmatpush3.bf16.msra.mxu0 %v1246_v8 }
  0x20   :  { %1127 = vmatprep.subr.bf16.mxu0 %v1263_v17 }
  0x22   :  { %1080 = vmatmul.mubr.bf16.vlgmr.msra.gmra.mxu0 %v1248_v9 }
  0x23   :  { %1083 = vmatprep.mubr.bf16.mxu0 %v1249_v10  ;;  %1128 = vmatpush3.bf16.msra.mxu0 %v1263_v17 }
  0x24   :  { %1129 = vmatprep.subr.bf16.mxu0 %v1264_v18 }
  0x27   :  { %1130 = vmatpush3.bf16.msra.mxu0 %v1264_v18 }
  0x28   :  { %1131 = vmatprep.subr.bf16.mxu0 %v1265_v19 }
  0x2a   :  { %1084 = vmatmul.mubr.bf16.gmra.mxu0 %v1250_v11 }
  0x2b   :  { %1087 = vmatprep.mubr.bf16.mxu0 %v1251_v12  ;;  %1132 = vmatpush3.bf16.msra.mxu0 %v1265_v19 }
  0x2c   :  { %1133 = vmatprep.subr.bf16.mxu0 %v1266_v20 }
  0x2f   :  { %1134 = vmatpush3.bf16.msra.mxu0 %v1266_v20 }
  0x30   :  { %1135 = vmatprep.subr.bf16.mxu0 %v1267_v21 }
  0x32   :  { %1088 = vmatmul.mubr.bf16.gmra.mxu0 %v1252_v13 }
  0x33   :  { %1091 = vmatprep.mubr.bf16.mxu0 %v1253_v14  ;;  %1136 = vmatpush3.bf16.msra.mxu0 %v1267_v21 }
  0x34   :  { %1137 = vmatprep.subr.bf16.mxu0 %v1268_v53 }
  0x37   :  { %1138 = vmatpush3.bf16.msra.mxu0 %v1268_v53 }
  0x38   :  { %1139 = vmatprep.subr.bf16.mxu0 %v1269_v54 }
  0x3a   :  { %1092 = vmatmul.mubr.bf16.gmra.mxu0 %v1254_v15 }
  0x3b   :  { %1140 = vmatpush3.bf16.msra.mxu0 %v1269_v54 }
  0x3c   :  { %1141 = vmatprep.subr.bf16.mxu0 %v1270_v55 }
  0x3f   :  { %1142 = vmatpush3.bf16.msra.mxu0 %v1270_v55 }
  0xe2   :  { %v1081_v22 = vpop.f32.mrf.mxu0 }
  0xe4   :  { %v208_v23 = vpop.f32.mrf.mxu0 }
  0xe6   :  { %v1082_v24 = vpop.f32.mrf.mxu0 }
  0xe7   :  { %v272_v44 = vpack.c.bf16 %v1082_v24, %v1081_v22 }
  0xe8   :  { %v211_v25 = vpop.f32.mrf.mxu0 }
  0xe9   :  { %v271_v45 = vpack.c.bf16 %v211_v25, %v208_v23 }
  0xea   :  { %v1085_v26 = vpop.f32.mrf.mxu0 }
  0xec   :  { %v224_v27 = vpop.f32.mrf.mxu0 }
  0xee   :  { %v1086_v28 = vpop.f32.mrf.mxu0 }
  0xef   :  { %v274_v42 = vpack.c.bf16 %v1086_v28, %v1085_v26 }
  0xf0   :  { %v227_v29 = vpop.f32.mrf.mxu0 }
  0xf1   :  { %v273_v43 = vpack.c.bf16 %v227_v29, %v224_v27 }
  0xf2   :  { %v1089_v30 = vpop.f32.mrf.mxu0 }
  0xf4   :  { %v240_v31 = vpop.f32.mrf.mxu0 }
  0xf6   :  { %v1090_v32 = vpop.f32.mrf.mxu0 }
  0xf7   :  { %v276_v40 = vpack.c.bf16 %v1090_v32, %v1089_v30 }
  0xf8   :  { %v243_v33 = vpop.f32.mrf.mxu0 }
  0xf9   :  { %v275_v41 = vpack.c.bf16 %v243_v33, %v240_v31 }
  0xfa   :  { %v1093_v34 = vpop.f32.mrf.mxu0 }
  0xfc   :  { %v256_v35 = vpop.f32.mrf.mxu0 }
  0xfe   :  { %v1094_v36 = vpop.f32.mrf.mxu0 }
  0xff   :  { %v278_v37 = vpack.c.bf16 %v1094_v36, %v1093_v34 }
 0x100   :  { %v259_v38 = vpop.f32.mrf.mxu0 }
 0x101   :  { %v277_v39 = vpack.c.bf16 %v259_v38, %v256_v35  ;;  %1095 = vmatprep.subr.bf16.mxu1 %v278_v37 }
 0x102   :  { %1096 = vmatpush3.bf16.msra.mxu1 %v278_v37 }
 0x103   :  { %1097 = vmatprep.subr.bf16.mxu1 %v277_v39 }
 0x106   :  { %1098 = vmatpush3.bf16.msra.mxu1 %v277_v39 }
 0x107   :  { %1099 = vmatprep.subr.bf16.mxu1 %v276_v40 }
 0x10a   :  { %1100 = vmatpush3.bf16.msra.mxu1 %v276_v40 }
 0x10b   :  { %1101 = vmatprep.subr.bf16.mxu1 %v275_v41 }
 0x10e   :  { %1102 = vmatpush3.bf16.msra.mxu1 %v275_v41 }
 0x10f   :  { %1103 = vmatprep.subr.bf16.mxu1 %v274_v42 }
 0x112   :  { %1104 = vmatpush3.bf16.msra.mxu1 %v274_v42 }
 0x113   :  { %1105 = vmatprep.subr.bf16.mxu1 %v273_v43 }
 0x116   :  { %1106 = vmatpush3.bf16.msra.mxu1 %v273_v43 }
 0x117   :  { %1107 = vmatprep.subr.bf16.mxu1 %v272_v44 }
 0x11a   :  { %1108 = vmatpush3.bf16.msra.mxu1 %v272_v44 }
 0x11b   :  { %1109 = vmatprep.subr.bf16.mxu1 %v271_v45 }
 0x11e   :  { %1110 = vmatpush3.bf16.msra.mxu1 %v271_v45 }
 0x121   :  { %1112 = vmatmul.mubr.bf16.vlgmr.msra.gmra.mxu1 %v1396_v46 }
 0x122   :  { %1115 = vmatprep.mubr.bf16.mxu1 %v1401_v47 }
 0x129   :  { %1116 = vmatmul.mubr.bf16.gmra.mxu1 %v1408_v48 }
 0x12a   :  { %1119 = vmatprep.mubr.bf16.mxu1 %v1413_v49 }
 0x131   :  { %1120 = vmatmul.mubr.bf16.gmra.mxu1 %v1420_v50 }
 0x132   :  { %1123 = vmatprep.mubr.bf16.mxu1 %v1425_v51 }
 0x139   :  { %1124 = vmatmul.mubr.bf16.gmra.mxu1 %v1432_v52 }
 0x13a   :  { %1175 = vmatprep.mubr.bf16.mxu1 %v1375_v16 }
 0x1e1   :  { %v1113_v56 = vpop.f32.mrf.mxu1 }
 0x1e2   :  { %v377_v62 = vadd.f32 %v1113_v56, %v956_v58  ;;  %v1271_v56 = vld [vmem:[%s1538_s6 + $0x38] sm:$0xff]  }
 0x1e3   :  { %v368_v57 = vpop.f32.mrf.mxu1  ;;  %1191 = vmatprep.subr.bf16.mxu0 %v1271_v56 }
 0x1e4   :  { %v369_v60 = vadd.f32 %v956_v58, %v368_v57  ;;  %v433_v5 = vmax.f32 %v377_v62, 0.0  ;;  %v1272_v57 = vld [vmem:[%s1538_s6 + $0x30] sm:$0xff]  }
 0x1e5   :  { %v1114_v59 = vpop.f32.mrf.mxu1 }
 0x1e6   :  { %v380_v61 = vadd.f32 %v1114_v59, %v956_v58  ;;  %v431_v3 = vmax.f32 %v369_v60, 0.0  ;;  %v1274_v59 = vld [vmem:[%s1538_s6 + $0x20] sm:$0xff]   ;;  %v1275_v60 = vld [vmem:[%s1538_s6 + $0x18] sm:$0xff]  }
 0x1e7   :  { %v371_v63 = vpop.f32.mrf.mxu1 }
 0x1e8   :  { %v372_v0 = vadd.f32 %v956_v58, %v371_v63  ;;  %v434_v1 = vmax.f32 %v380_v61, 0.0 }
 0x1e9   :  { %v1117_v2 = vpop.f32.mrf.mxu1 }
 0x1ea   :  { %v432_v4 = vmax.f32 %v372_v0, 0.0  ;;  %v448_v8 = vpack.c.bf16 %v434_v1, %v433_v5  ;;  %v393_v12 = vadd.f32 %v1117_v2, %v956_v58 }
 0x1eb   :  { %v384_v6 = vpop.f32.mrf.mxu1 }
 0x1ec   :  { %v447_v7 = vpack.c.bf16 %v432_v4, %v431_v3  ;;  %v385_v10 = vadd.f32 %v956_v58, %v384_v6  ;;  %v437_v19 = vmax.f32 %v393_v12, 0.0 }
 0x1ed   :  { %v1118_v9 = vpop.f32.mrf.mxu1 }
 0x1ee   :  { %v396_v11 = vadd.f32 %v1118_v9, %v956_v58  ;;  %1143 = vmatprep.mubr.bf16.mxu0 %v447_v7  ;;  %v435_v17 = vmax.f32 %v385_v10, 0.0 }
 0x1ef   :  { %v387_v13 = vpop.f32.mrf.mxu1  ;;  %1144 = vmatmul.mubr.bf16.vlgmr.msra.gmra.mxu0 %v448_v8 }
 0x1f0   :  { %v388_v14 = vadd.f32 %v956_v58, %v387_v13  ;;  %v438_v15 = vmax.f32 %v396_v11, 0.0  ;;  %1192 = vmatpush3.bf16.msra.mxu0 %v1271_v56 }
 0x1f1   :  { %v1121_v16 = vpop.f32.mrf.mxu1  ;;  %1193 = vmatprep.subr.bf16.mxu0 %v1272_v57 }
 0x1f2   :  { %v436_v18 = vmax.f32 %v388_v14, 0.0  ;;  %v450_v22 = vpack.c.bf16 %v438_v15, %v437_v19  ;;  %v409_v26 = vadd.f32 %v1121_v16, %v956_v58 }
 0x1f3   :  { %v400_v20 = vpop.f32.mrf.mxu1 }
 0x1f4   :  { %v449_v21 = vpack.c.bf16 %v436_v18, %v435_v17  ;;  %v401_v24 = vadd.f32 %v956_v58, %v400_v20  ;;  %v441_v33 = vmax.f32 %v409_v26, 0.0  ;;  %1194 = vmatpush3.bf16.msra.mxu0 %v1272_v57 }
 0x1f5   :  { %v1122_v23 = vpop.f32.mrf.mxu1 }
 0x1f6   :  { %v412_v25 = vadd.f32 %v1122_v23, %v956_v58  ;;  %1147 = vmatprep.mubr.bf16.mxu0 %v449_v21  ;;  %v439_v31 = vmax.f32 %v401_v24, 0.0 }
 0x1f7   :  { %v403_v27 = vpop.f32.mrf.mxu1  ;;  %1148 = vmatmul.mubr.bf16.gmra.mxu0 %v450_v22 }
 0x1f8   :  { %v404_v28 = vadd.f32 %v956_v58, %v403_v27  ;;  %v442_v29 = vmax.f32 %v412_v25, 0.0 }
 0x1f9   :  { %v1125_v30 = vpop.f32.mrf.mxu1 }
 0x1fa   :  { %v440_v32 = vmax.f32 %v404_v28, 0.0  ;;  %v452_v36 = vpack.c.bf16 %v442_v29, %v441_v33  ;;  %v425_v40 = vadd.f32 %v1125_v30, %v956_v58 }
 0x1fb   :  { %v416_v34 = vpop.f32.mrf.mxu1 }
 0x1fc   :  { %v451_v35 = vpack.c.bf16 %v440_v32, %v439_v31  ;;  %v417_v38 = vadd.f32 %v956_v58, %v416_v34  ;;  %v445_v53 = vmax.f32 %v425_v40, 0.0 }
 0x1fd   :  { %v1126_v37 = vpop.f32.mrf.mxu1 }
 0x1fe   :  { %v428_v39 = vadd.f32 %v1126_v37, %v956_v58  ;;  %1151 = vmatprep.mubr.bf16.mxu0 %v451_v35  ;;  %v443_v44 = vmax.f32 %v417_v38, 0.0 }
 0x1ff   :  { %v419_v41 = vpop.f32.mrf.mxu1  ;;  %1152 = vmatmul.mubr.bf16.gmra.mxu0 %v452_v36 }
 0x200   :  { %v420_v42 = vadd.f32 %v956_v58, %v419_v41  ;;  %v446_v43 = vmax.f32 %v428_v39, 0.0  ;;  %v1273_v58 = vld [vmem:[%s1538_s6 + $0x28] sm:$0xff]  }
 0x201   :  { %1195 = vmatprep.subr.bf16.mxu0 %v1273_v58 }
 0x202   :  { %v444_v45 = vmax.f32 %v420_v42, 0.0  ;;  %v454_v55 = vpack.c.bf16 %v446_v43, %v445_v53  ;;  %1196 = vmatpush3.bf16.msra.mxu0 %v1273_v58 }
 0x203   :  { %1197 = vmatprep.subr.bf16.mxu0 %v1274_v59 }
 0x204   :  { %v453_v54 = vpack.c.bf16 %v444_v45, %v443_v44 }
 0x206   :  { %1155 = vmatprep.mubr.bf16.mxu0 %v453_v54  ;;  %1198 = vmatpush3.bf16.msra.mxu0 %v1274_v59 }
 0x207   :  { %1156 = vmatmul.mubr.bf16.gmra.mxu0 %v454_v55  ;;  %1199 = vmatprep.subr.bf16.mxu0 %v1275_v60 }
 0x20a   :  { %1200 = vmatpush3.bf16.msra.mxu0 %v1275_v60 }
 0x2af   :  { %v1145_v61 = vpop.f32.mrf.mxu0 }
 0x2b1   :  { %v553_v62 = vpop.f32.mrf.mxu0 }
 0x2b3   :  { %v1146_v63 = vpop.f32.mrf.mxu0 }
 0x2b4   :  { %v617_v19 = vpack.c.bf16 %v1146_v63, %v1145_v61 }
 0x2b5   :  { %v556_v0 = vpop.f32.mrf.mxu0 }
 0x2b6   :  { %v616_v20 = vpack.c.bf16 %v556_v0, %v553_v62 }
 0x2b7   :  { %v1149_v1 = vpop.f32.mrf.mxu0 }
 0x2b9   :  { %v569_v2 = vpop.f32.mrf.mxu0 }
 0x2bb   :  { %v1150_v3 = vpop.f32.mrf.mxu0 }
 0x2bc   :  { %v619_v17 = vpack.c.bf16 %v1150_v3, %v1149_v1 }
 0x2bd   :  { %v572_v4 = vpop.f32.mrf.mxu0 }
 0x2be   :  { %v618_v18 = vpack.c.bf16 %v572_v4, %v569_v2 }
 0x2bf   :  { %v1153_v5 = vpop.f32.mrf.mxu0 }
 0x2c1   :  { %v585_v6 = vpop.f32.mrf.mxu0 }
 0x2c3   :  { %v1154_v7 = vpop.f32.mrf.mxu0 }
 0x2c4   :  { %v621_v15 = vpack.c.bf16 %v1154_v7, %v1153_v5 }
 0x2c5   :  { %v588_v8 = vpop.f32.mrf.mxu0 }
 0x2c6   :  { %v620_v16 = vpack.c.bf16 %v588_v8, %v585_v6 }
 0x2c7   :  { %v1157_v9 = vpop.f32.mrf.mxu0 }
 0x2c9   :  { %v601_v10 = vpop.f32.mrf.mxu0 }
 0x2cb   :  { %v1158_v11 = vpop.f32.mrf.mxu0 }
 0x2cc   :  { %v623_v12 = vpack.c.bf16 %v1158_v11, %v1157_v9 }
 0x2cd   :  { %v604_v13 = vpop.f32.mrf.mxu0 }
 0x2ce   :  { %v622_v14 = vpack.c.bf16 %v604_v13, %v601_v10  ;;  %1159 = vmatprep.subr.bf16.mxu1 %v623_v12 }
 0x2cf   :  { %1160 = vmatpush3.bf16.msra.mxu1 %v623_v12 }
 0x2d0   :  { %1161 = vmatprep.subr.bf16.mxu1 %v622_v14 }
 0x2d3   :  { %1162 = vmatpush3.bf16.msra.mxu1 %v622_v14 }
 0x2d4   :  { %1163 = vmatprep.subr.bf16.mxu1 %v621_v15 }
 0x2d7   :  { %1164 = vmatpush3.bf16.msra.mxu1 %v621_v15 }
 0x2d8   :  { %1165 = vmatprep.subr.bf16.mxu1 %v620_v16 }
 0x2db   :  { %1166 = vmatpush3.bf16.msra.mxu1 %v620_v16 }
 0x2dc   :  { %1167 = vmatprep.subr.bf16.mxu1 %v619_v17 }
 0x2df   :  { %1168 = vmatpush3.bf16.msra.mxu1 %v619_v17  ;;  %v974_v17 = vld [vmem:[%s1540_s7] ss:$0 sm:$0xff] }
 0x2e0   :  { %1169 = vmatprep.subr.bf16.mxu1 %v618_v18 }
 0x2e3   :  { %1170 = vmatpush3.bf16.msra.mxu1 %v618_v18 }
 0x2e4   :  { %1171 = vmatprep.subr.bf16.mxu1 %v617_v19 }
 0x2e7   :  { %1172 = vmatpush3.bf16.msra.mxu1 %v617_v19 }
 0x2e8   :  { %1173 = vmatprep.subr.bf16.mxu1 %v616_v20 }
 0x2eb   :  { %1174 = vmatpush3.bf16.msra.mxu1 %v616_v20 }
 0x2ec   :  { %1223 = vmatprep.subr.bf16.mxu1 %v1271_v56 }
 0x2ee   :  { %1176 = vmatmul.mubr.bf16.vlgmr.msra.gmra.mxu1 %v1396_v46  ;;  %v1276_v46 = vld [vmem:[%s1538_s6 + $0x10] sm:$0xff]  }
 0x2ef   :  { %1179 = vmatprep.mubr.bf16.mxu1 %v1401_v47  ;;  %1231 = vmatpush3.bf16.msra.mxu1 %v1271_v56  ;;  %v1277_v47 = vld [vmem:[%s1538_s6 + $0x8] sm:$0xff]  }
 0x2f0   :  { %1224 = vmatprep.subr.bf16.mxu1 %v1272_v57  ;;  %1201 = vmatprep.subr.bf16.mxu0 %v1276_v46 }
 0x2f1   :  { %1202 = vmatpush3.bf16.msra.mxu0 %v1276_v46 }
 0x2f2   :  { %1203 = vmatprep.subr.bf16.mxu0 %v1277_v47 }
 0x2f3   :  { %1232 = vmatpush3.bf16.msra.mxu1 %v1272_v57 }
 0x2f4   :  { %1225 = vmatprep.subr.bf16.mxu1 %v1273_v58 }
 0x2f5   :  { %1204 = vmatpush3.bf16.msra.mxu0 %v1277_v47 }
 0x2f6   :  { %1180 = vmatmul.mubr.bf16.gmra.mxu1 %v1408_v48  ;;  %v1278_v48 = vld [vmem:[%s1538_s6] sm:$0xff]  }
 0x2f7   :  { %1183 = vmatprep.mubr.bf16.mxu1 %v1413_v49  ;;  %1233 = vmatpush3.bf16.msra.mxu1 %v1273_v58 }
 0x2f8   :  { %1226 = vmatprep.subr.bf16.mxu1 %v1274_v59  ;;  %1205 = vmatprep.subr.bf16.mxu0 %v1278_v48 }
 0x2f9   :  { %1206 = vmatpush3.bf16.msra.mxu0 %v1278_v48 }
 0x2fb   :  { %1234 = vmatpush3.bf16.msra.mxu1 %v1274_v59 }
 0x2fc   :  { %1227 = vmatprep.subr.bf16.mxu1 %v1275_v60 }
 0x2fe   :  { %1184 = vmatmul.mubr.bf16.gmra.mxu1 %v1420_v50 }
 0x2ff   :  { %1187 = vmatprep.mubr.bf16.mxu1 %v1425_v51  ;;  %1235 = vmatpush3.bf16.msra.mxu1 %v1275_v60  ;;  %v973_v51 = vld [vmem:[%s1539_s5] ss:$0 sm:$0xff] }
 0x300   :  { %1228 = vmatprep.subr.bf16.mxu1 %v1276_v46 }
 0x303   :  { %1236 = vmatpush3.bf16.msra.mxu1 %v1276_v46 }
 0x304   :  { %1229 = vmatprep.subr.bf16.mxu1 %v1277_v47 }
 0x306   :  { %1188 = vmatmul.mubr.bf16.gmra.mxu1 %v1432_v52 }
 0x307   :  { %1237 = vmatpush3.bf16.msra.mxu1 %v1277_v47 }
 0x308   :  { %1230 = vmatprep.subr.bf16.mxu1 %v1278_v48 }
 0x30b   :  { %1238 = vmatpush3.bf16.msra.mxu1 %v1278_v48 }
 0x3ae   :  { %v1177_v49 = vpop.f32.mrf.mxu1 }
 0x3af   :  { %v674_v23 = vadd.f32 %v1177_v49, %v973_v51 }
 0x3b0   :  { %v665_v50 = vpop.f32.mrf.mxu1 }
 0x3b1   :  { %v666_v21 = vadd.f32 %v973_v51, %v665_v50  ;;  %v730_v30 = vmax.f32 %v674_v23, 0.0 }
 0x3b2   :  { %v1178_v52 = vpop.f32.mrf.mxu1 }
 0x3b3   :  { %v677_v22 = vadd.f32 %v1178_v52, %v973_v51  ;;  %v728_v28 = vmax.f32 %v666_v21, 0.0 }
 0x3b4   :  { %v668_v24 = vpop.f32.mrf.mxu1 }
 0x3b5   :  { %v669_v25 = vadd.f32 %v973_v51, %v668_v24  ;;  %v731_v26 = vmax.f32 %v677_v22, 0.0 }
 0x3b6   :  { %v1181_v27 = vpop.f32.mrf.mxu1 }
 0x3b7   :  { %v729_v29 = vmax.f32 %v669_v25, 0.0  ;;  %v745_v33 = vpack.c.bf16 %v731_v26, %v730_v30  ;;  %v690_v37 = vadd.f32 %v1181_v27, %v973_v51 }
 0x3b8   :  { %v681_v31 = vpop.f32.mrf.mxu1 }
 0x3b9   :  { %v744_v32 = vpack.c.bf16 %v729_v29, %v728_v28  ;;  %v682_v35 = vadd.f32 %v973_v51, %v681_v31  ;;  %v734_v44 = vmax.f32 %v690_v37, 0.0 }
 0x3ba   :  { %v1182_v34 = vpop.f32.mrf.mxu1 }
 0x3bb   :  { %v693_v36 = vadd.f32 %v1182_v34, %v973_v51  ;;  %1207 = vmatprep.mubr.bf16.mxu0 %v744_v32  ;;  %v732_v42 = vmax.f32 %v682_v35, 0.0 }
 0x3bc   :  { %v684_v38 = vpop.f32.mrf.mxu1  ;;  %1208 = vmatmul.mubr.bf16.vlgmr.msra.gmra.mxu0 %v745_v33 }
 0x3bd   :  { %v685_v39 = vadd.f32 %v973_v51, %v684_v38  ;;  %v735_v40 = vmax.f32 %v693_v36, 0.0 }
 0x3be   :  { %v1185_v41 = vpop.f32.mrf.mxu1 }
 0x3bf   :  { %v733_v43 = vmax.f32 %v685_v39, 0.0  ;;  %v747_v54 = vpack.c.bf16 %v735_v40, %v734_v44  ;;  %v706_v58 = vadd.f32 %v1185_v41, %v973_v51 }
 0x3c0   :  { %v697_v45 = vpop.f32.mrf.mxu1 }
 0x3c1   :  { %v746_v53 = vpack.c.bf16 %v733_v43, %v732_v42  ;;  %v698_v56 = vadd.f32 %v973_v51, %v697_v45  ;;  %v738_v1 = vmax.f32 %v706_v58, 0.0 }
 0x3c2   :  { %v1186_v55 = vpop.f32.mrf.mxu1 }
 0x3c3   :  { %v709_v57 = vadd.f32 %v1186_v55, %v973_v51  ;;  %1211 = vmatprep.mubr.bf16.mxu0 %v746_v53  ;;  %v736_v63 = vmax.f32 %v698_v56, 0.0 }
 0x3c4   :  { %v700_v59 = vpop.f32.mrf.mxu1  ;;  %1212 = vmatmul.mubr.bf16.gmra.mxu0 %v747_v54 }
 0x3c5   :  { %v701_v60 = vadd.f32 %v973_v51, %v700_v59  ;;  %v739_v61 = vmax.f32 %v709_v57, 0.0 }
 0x3c6   :  { %v1189_v62 = vpop.f32.mrf.mxu1 }
 0x3c7   :  { %v737_v0 = vmax.f32 %v701_v60, 0.0  ;;  %v749_v4 = vpack.c.bf16 %v739_v61, %v738_v1  ;;  %v722_v8 = vadd.f32 %v1189_v62, %v973_v51 }
 0x3c8   :  { %v713_v2 = vpop.f32.mrf.mxu1 }
 0x3c9   :  { %v748_v3 = vpack.c.bf16 %v737_v0, %v736_v63  ;;  %v714_v6 = vadd.f32 %v973_v51, %v713_v2  ;;  %v742_v14 = vmax.f32 %v722_v8, 0.0 }
 0x3ca   :  { %v1190_v5 = vpop.f32.mrf.mxu1 }
 0x3cb   :  { %v725_v7 = vadd.f32 %v1190_v5, %v973_v51  ;;  %1215 = vmatprep.mubr.bf16.mxu1 %v748_v3  ;;  %v740_v12 = vmax.f32 %v714_v6, 0.0 }
 0x3cc   :  { %v716_v9 = vpop.f32.mrf.mxu1  ;;  %1216 = vmatmul.mubr.bf16.vlgmr.msra.gmra.mxu1 %v749_v4 }
 0x3cd   :  { %v717_v10 = vadd.f32 %v973_v51, %v716_v9  ;;  %v743_v11 = vmax.f32 %v725_v7, 0.0 }
 0x3cf   :  { %v741_v13 = vmax.f32 %v717_v10, 0.0  ;;  %v751_v16 = vpack.c.bf16 %v743_v11, %v742_v14 }
 0x3d1   :  { %v750_v15 = vpack.c.bf16 %v741_v13, %v740_v12 }
 0x3d3   :  { %1219 = vmatprep.mubr.bf16.mxu1 %v750_v15 }
 0x3d4   :  { %1220 = vmatmul.mubr.bf16.gmra.mxu1 %v751_v16 }
 0x47c   :  { %v1209_v18 = vpop.f32.mrf.mxu0 }
 0x47d   :  { %v866_v19 = vadd.f32 %v1209_v18, %v974_v17 }
 0x47e   :  { %v857_v20 = vpop.f32.mrf.mxu0 }
 0x47f   :  { %922 = vst [vmem:[%s1541_s8 + $0x10] sm:$0xff] %v866_v19  ;;  %v858_v46 = vadd.f32 %v974_v17, %v857_v20 }
 0x480   :  { %v1210_v47 = vpop.f32.mrf.mxu0 }
 0x481   :  { %920 = vst [vmem:[%s1541_s8] sm:$0xff] %v858_v46  ;;  %v869_v48 = vadd.f32 %v1210_v47, %v974_v17 }
 0x482   :  { %v860_v49 = vpop.f32.mrf.mxu0 }
 0x483   :  { %923 = vst [vmem:[%s1541_s8 + $0x18] sm:$0xff] %v869_v48  ;;  %v861_v50 = vadd.f32 %v974_v17, %v860_v49 }
 0x484   :  { %v1213_v51 = vpop.f32.mrf.mxu0 }
 0x485   :  { %921 = vst [vmem:[%s1541_s8 + $0x8] sm:$0xff] %v861_v50  ;;  %v882_v52 = vadd.f32 %v1213_v51, %v974_v17 }
 0x486   :  { %v873_v21 = vpop.f32.mrf.mxu0 }
 0x487   :  { %926 = vst [vmem:[%s1541_s8 + $0x30] sm:$0xff] %v882_v52  ;;  %v874_v22 = vadd.f32 %v974_v17, %v873_v21 }
 0x488   :  { %v1214_v23 = vpop.f32.mrf.mxu0 }
 0x489   :  { %924 = vst [vmem:[%s1541_s8 + $0x20] sm:$0xff] %v874_v22  ;;  %v885_v24 = vadd.f32 %v1214_v23, %v974_v17 }
 0x48a   :  { %v876_v25 = vpop.f32.mrf.mxu0 }
 0x48b   :  { %927 = vst [vmem:[%s1541_s8 + $0x38] sm:$0xff] %v885_v24  ;;  %v877_v26 = vadd.f32 %v974_v17, %v876_v25 }
 0x48c   :  { %v1217_v27 = vpop.f32.mrf.mxu1 }
 0x48d   :  { %925 = vst [vmem:[%s1541_s8 + $0x28] sm:$0xff] %v877_v26  ;;  %v898_v28 = vadd.f32 %v1217_v27, %v974_v17 }
 0x48e   :  { %v889_v29 = vpop.f32.mrf.mxu1 }
 0x48f   :  { %930 = vst [vmem:[%s1541_s8 + $0x50] sm:$0xff] %v898_v28  ;;  %v890_v30 = vadd.f32 %v974_v17, %v889_v29 }
 0x490   :  { %v1218_v31 = vpop.f32.mrf.mxu1 }
 0x491   :  { %928 = vst [vmem:[%s1541_s8 + $0x40] sm:$0xff] %v890_v30  ;;  %v901_v32 = vadd.f32 %v1218_v31, %v974_v17 }
 0x492   :  { %v892_v33 = vpop.f32.mrf.mxu1 }
 0x493   :  { %931 = vst [vmem:[%s1541_s8 + $0x58] sm:$0xff] %v901_v32  ;;  %v893_v34 = vadd.f32 %v974_v17, %v892_v33 }
 0x494   :  { %v1221_v35 = vpop.f32.mrf.mxu1 }
 0x495   :  { %929 = vst [vmem:[%s1541_s8 + $0x48] sm:$0xff] %v893_v34  ;;  %v914_v36 = vadd.f32 %v1221_v35, %v974_v17 }
 0x496   :  { %v905_v37 = vpop.f32.mrf.mxu1 }
 0x497   :  { %934 = vst [vmem:[%s1541_s8 + $0x70] sm:$0xff] %v914_v36  ;;  %v906_v38 = vadd.f32 %v974_v17, %v905_v37 }
 0x498   :  { %v1222_v39 = vpop.f32.mrf.mxu1 }
 0x499   :  { %932 = vst [vmem:[%s1541_s8 + $0x60] sm:$0xff] %v906_v38  ;;  %v917_v40 = vadd.f32 %v1222_v39, %v974_v17 }
 0x49a   :  { %v908_v41 = vpop.f32.mrf.mxu1 }
 0x49b   :  { %935 = vst [vmem:[%s1541_s8 + $0x78] sm:$0xff] %v917_v40  ;;  %v909_v42 = vadd.f32 %v974_v17, %v908_v41 }
 0x49d   :  { %933 = vst [vmem:[%s1541_s8 + $0x68] sm:$0xff] %v909_v42 }

</bundles_post_ra>
